<compile_context>
chip_gen: v7x
topology: tpu7x:2x2x1
jax: 0.10.0
libtpu: 0.0.40
codegen_flags: <defaults>
</compile_context>

<pallas_src>
import jax
import jax.numpy as jnp
from jax.experimental import pallas as pl
from jax.experimental.pallas import tpu as pltpu


# ---------------------------------------------------------------------------
# Glue: deterministic interpolation-matrix construction (plain JAX, trace-time)
# ---------------------------------------------------------------------------
def interp_matrix_align_corners(in_size: int, out_size: int) -> jnp.ndarray:
    """1-D bilinear interpolation matrix A (out_size, in_size), align_corners=True."""
    if in_size == 1:
        return jnp.ones((out_size, 1), dtype=jnp.float32)
    if out_size == 1:
        # PyTorch align_corners=True with a single output sample takes input coord 0.
        return jnp.zeros((1, in_size), dtype=jnp.float32).at[0, 0].set(1.0)
    idx = jnp.arange(out_size, dtype=jnp.float32)
    src = idx * (in_size - 1) / (out_size - 1)          # PyTorch align_corners=True mapping
    left = jnp.clip(jnp.floor(src).astype(jnp.int32), 0, in_size - 1)
    right = jnp.clip(left + 1, 0, in_size - 1)
    frac = src - left.astype(jnp.float32)
    A = jnp.zeros((out_size, in_size), dtype=jnp.float32)
    A = A.at[jnp.arange(out_size), left].add(1.0 - frac)
    A = A.at[jnp.arange(out_size), right].add(frac)
    return A


# ---------------------------------------------------------------------------
# Pallas kernel: per grid step, nb batch images ride in the lane dimension.
#   stage 1: 1x1 conv (channel mix, scalar weights from SMEM, VPU)
#   stage 2: H-axis interp    z = Ah @ y                     (MXU, K = H)
#   stage 3: W-axis interp    o = z @ kron(I_nb, Aw^T)       (MXU, lane-dense store)
# ---------------------------------------------------------------------------
def _upsample_kernel(w2_ref, bias_ref, x_ref, ah_ref, cw_ref, o_ref):
    # w2_ref  : SMEM (Cout*Cin,) f32   -- 1x1 conv weights, row-major (o*Cin + c)
    # bias_ref: SMEM (Cout,)     f32   -- conv bias (zeros when bias=False)
    # x_ref   : VMEM (Cin, H, nb*W)    -- nb images folded into the lane dim
    # ah_ref  : VMEM (Ho, H)           -- H-axis bilinear interp matrix
    # cw_ref  : VMEM (nb*W, nb*Wo)     -- kron(I_nb, Aw^T): per-image W-axis interp
    # o_ref   : VMEM (Cout, Ho, nb*Wo)
    cin = x_ref.shape[0]
    cout = o_ref.shape[0]

    ah = ah_ref[...]
    cw = cw_ref[...]

    # Channel counts are small, static module hyper-parameters (Cout = Cin / chan_factor),
    # so a static loop is fine here: each iteration ends in a full lane-dense store, which
    # bounds live intermediates to one (H, nb*W) mix and one (Ho, nb*W) tile.
    # TODO(synk): for large Cin/Cout the channel mix should become a K=Cin MXU matmul
    # (costs one relayout of the conv output); at this module's channel counts the
    # scalar-weight VPU mix is cheaper and needs no relayout.
    for o in range(cout):
        y = bias_ref[o] + w2_ref[o * cin] * x_ref[0]
        for c in range(1, cin):
            y = y + w2_ref[o * cin + c] * x_ref[c]                     # (H, nb*W)
        z = jnp.dot(ah, y, preferred_element_type=jnp.float32)         # (Ho, nb*W)
        o_ref[o] = jnp.dot(z, cw,
                           preferred_element_type=jnp.float32).astype(o_ref.dtype)


# ---------------------------------------------------------------------------
# Batch-folding policy
# ---------------------------------------------------------------------------
def _choose_batch_fold(n: int, wo: int) -> tuple[int, int]:
    """Pick (nb, padded_N): nb images folded into the lane dim per grid step."""
    nb_cap = max(1, 512 // wo)                # keep the output slab <= ~512 lanes
    nb_want = min(nb_cap, pl.cdiv(128, wo))   # images needed to fill one full vreg of lanes
    # Largest divisor of n within the lane cap.
    nb = max(d for d in range(1, min(n, nb_cap) + 1) if n % d == 0)
    n_pad = n
    if nb * wo < 128 and nb_want > nb and nb_want * pl.cdiv(n, nb_want) <= 2 * n:
        # No divisor reaches a full vreg of lanes: pad the batch (waste capped at 2x)
        # instead of issuing narrow masked stores / per-image grid steps.
        nb = nb_want
        n_pad = nb * pl.cdiv(n, nb)
    # Prefer >= 2 grid steps (v7x has two TensorCores) when it costs no lane density.
    if n_pad // nb < 2:
        for d in range(nb - 1, 0, -1):
            if n_pad % d == 0 and (n_pad // d) >= 2 and d * wo >= 128:
                nb = d
                break
    return nb, n_pad


# ---------------------------------------------------------------------------
# Wrapper: layout plumbing + pallas_call
# ---------------------------------------------------------------------------
def upsample_forward(x_nchw: jnp.ndarray, conv_weight: jnp.ndarray,
                     conv_bias: jnp.ndarray | None = None) -> jnp.ndarray:
    """Equivalent of UpSample.forward.
    x_nchw: (N, Cin, H, W); conv_weight: (Cout, Cin, 1, 1); conv_bias: (Cout,) or None."""
    N, Cin, H, W = x_nchw.shape
    Cout = conv_weight.shape[0]
    Ho, Wo = 2 * H, 2 * W

    nb, Np = _choose_batch_fold(N, Wo)
    G = Np // nb

    x = x_nchw.astype(jnp.float32)
    if Np != N:
        x = jnp.pad(x, ((0, Np - N), (0, 0), (0, 0), (0, 0)))
    # Wrapper-side layout plumbing (cheap XLA transpose): fold nb images into the last
    # (lane) axis so the kernel sees lane-dense 2-D tiles per channel.
    xg = x.reshape(G, nb, Cin, H, W).transpose(0, 2, 3, 1, 4).reshape(G, Cin, H, nb * W)

    w2 = conv_weight[:, :, 0, 0].astype(jnp.float32).reshape(Cout * Cin)
    bias = (jnp.zeros((Cout,), jnp.float32) if conv_bias is None
            else conv_bias.astype(jnp.float32).reshape(Cout))

    ah = interp_matrix_align_corners(H, Ho)                    # (Ho, H)
    aw = interp_matrix_align_corners(W, Wo)                    # (Wo, W)
    cw = jnp.kron(jnp.eye(nb, dtype=jnp.float32), aw.T)        # (nb*W, nb*Wo), block-diag

    step_bytes = 4 * (Cin * H * nb * W + Cout * Ho * nb * Wo + Ho * H + (nb * W) * (nb * Wo))
    flops = (2 * Np * Cout * Cin * H * W            # 1x1 conv
             + 2 * Np * Cout * Ho * H * W           # H-axis interpolation
             + 2 * Np * Cout * Ho * W * Wo)         # W-axis interpolation
    bytes_accessed = 4 * (Np * Cin * H * W + Np * Cout * Ho * Wo
                          + Ho * H + (nb * W) * (nb * Wo) + Cout * Cin + Cout)

    out_slab = pl.pallas_call(
        _upsample_kernel,
        out_shape=jax.ShapeDtypeStruct((G, Cout, Ho, nb * Wo), jnp.float32),
        grid_spec=pltpu.PrefetchScalarGridSpec(
            num_scalar_prefetch=0,
            grid=(G,),
            in_specs=[
                pl.BlockSpec(memory_space=pltpu.MemorySpace.SMEM),    # conv weights (scalars)
                pl.BlockSpec(memory_space=pltpu.MemorySpace.SMEM),    # conv bias (scalars)
                pl.BlockSpec((None, Cin, H, nb * W), lambda g: (g, 0, 0, 0)),
                # Grid-invariant interp operands; at these sizes their default double
                # buffer costs only a few KiB.
                # TODO(synk): for production-scale H/W add a W-axis grid dimension and
                # single-buffer these (pl.Buffered(1)) to fit v7x's 64 MiB VMEM.
                pl.BlockSpec((Ho, H), lambda g: (0, 0)),
                pl.BlockSpec((nb * W, nb * Wo), lambda g: (0, 0)),
            ],
            out_specs=pl.BlockSpec((None, Cout, Ho, nb * Wo), lambda g: (g, 0, 0, 0)),
        ),
        compiler_params=pltpu.CompilerParams(
            dimension_semantics=("parallel",),
            vmem_limit_bytes=int(min(64 * 2 ** 20, max(32 * 2 ** 20, 6 * step_bytes))),
        ),
        cost_estimate=pl.CostEstimate(flops=int(flops), transcendentals=0,
                                      bytes_accessed=int(bytes_accessed)),
    )(w2, bias, xg, ah, cw)

    # Undo the lane folding (cheap wrapper-side transpose) and drop any batch padding.
    out = (out_slab.reshape(G, Cout, Ho, nb, Wo)
           .transpose(0, 3, 1, 2, 4)
           .reshape(Np, Cout, Ho, Wo))
    return out[:N]


# ---------------------------------------------------------------------------
# Plain-JAX reference (for correctness check only)
# ---------------------------------------------------------------------------
def upsample_reference(x_nchw, conv_weight, conv_bias=None):
    N, Cin, H, W = x_nchw.shape
    Cout = conv_weight.shape[0]
    w = conv_weight[:, :, 0, 0].astype(jnp.float32)
    y = jnp.einsum('nchw,oc->nohw', x_nchw.astype(jnp.float32), w)
    if conv_bias is not None:
        y = y + conv_bias.astype(jnp.float32).reshape(1, Cout, 1, 1)
    ah = interp_matrix_align_corners(H, 2 * H)
    aw = interp_matrix_align_corners(W, 2 * W)
    return jnp.einsum('ph,nohw,qw->nopq', ah, y, aw)


if __name__ == "__main__":
    key = jax.random.PRNGKey(0)
    k_x, k_w, k_b = jax.random.split(key, 3)

    # UpSample(in_channels=4, chan_factor=2, bias=False)
    N, Cin, H, W = 2, 4, 16, 16
    chan_factor = 2
    Cout = int(Cin / chan_factor)

    x = jax.random.normal(k_x, (N, Cin, H, W), dtype=jnp.float32)
    conv_weight = 0.1 * jax.random.normal(k_w, (Cout, Cin, 1, 1), dtype=jnp.float32)

    out = jax.block_until_ready(upsample_forward(x, conv_weight))
    ref = jax.block_until_ready(upsample_reference(x, conv_weight))
    assert out.shape == (N, Cout, 2 * H, 2 * W), out.shape
    assert jnp.allclose(out, ref, atol=1e-4, rtol=1e-4), float(jnp.max(jnp.abs(out - ref)))

    # bias=True variant of the module (default construction uses bias=False).
    conv_bias = 0.05 * jax.random.normal(k_b, (Cout,), dtype=jnp.float32)
    out_b = jax.block_until_ready(upsample_forward(x, conv_weight, conv_bias))
    ref_b = jax.block_until_ready(upsample_reference(x, conv_weight, conv_bias))
    assert jnp.allclose(out_b, ref_b, atol=1e-4, rtol=1e-4), float(jnp.max(jnp.abs(out_b - ref_b)))

    print("KERNEL_OK")
</pallas_src>

<mosaic_0001>
module attributes {stable_mosaic.version = 11 : i64} {
  func.func @_upsample_kernel(%arg0: i32, %arg1: memref<8xf32, #tpu.memory_space<smem>>, %arg2: memref<2xf32, #tpu.memory_space<smem>>, %arg3: memref<1x4x16x64xf32, #tpu.memory_space<vmem>>, %arg4: memref<32x16xf32, #tpu.memory_space<vmem>>, %arg5: memref<64x128xf32, #tpu.memory_space<vmem>>, %arg6: memref<1x2x32x128xf32, #tpu.memory_space<vmem>>) attributes {dimension_semantics = [#tpu.dimension_semantics<parallel>], iteration_bounds = array<i64: 1>, scalar_prefetch = 0 : i64, scratch_operands = 0 : i64, tpu.core_type = #tpu.core_type<tc>, window_params = [{transform_indices = @transform_0, window_bounds = array<i64: 8>}, {transform_indices = @transform_1, window_bounds = array<i64: 2>}, {transform_indices = @transform_2, window_bounds = array<i64: 1, 4, 16, 64>}, {pipeline_mode = #tpu.pipeline_mode<synchronous>, transform_indices = @transform_3, window_bounds = array<i64: 32, 16>}, {pipeline_mode = #tpu.pipeline_mode<synchronous>, transform_indices = @transform_4, window_bounds = array<i64: 64, 128>}, {transform_indices = @transform_5, window_bounds = array<i64: 1, 2, 32, 128>}]} {
    %c0 = arith.constant 0 : index
    %c0_0 = arith.constant 0 : index
    %0 = vector.load %arg4[%c0, %c0_0] : memref<32x16xf32, #tpu.memory_space<vmem>>, vector<32x16xf32>
    %c0_1 = arith.constant 0 : index
    %c0_2 = arith.constant 0 : index
    %1 = vector.load %arg5[%c0_1, %c0_2] : memref<64x128xf32, #tpu.memory_space<vmem>>, vector<64x128xf32>
    %c0_3 = arith.constant 0 : index
    %2 = memref.load %arg2[%c0_3] : memref<2xf32, #tpu.memory_space<smem>>
    %c0_4 = arith.constant 0 : index
    %3 = memref.load %arg1[%c0_4] : memref<8xf32, #tpu.memory_space<smem>>
    %c0_5 = arith.constant 0 : index
    %c0_6 = arith.constant 0 : index
    %c0_7 = arith.constant 0 : index
    %c0_8 = arith.constant 0 : index
    %4 = vector.load %arg3[%c0_5, %c0_6, %c0_7, %c0_8] : memref<1x4x16x64xf32, #tpu.memory_space<vmem>>, vector<1x1x16x64xf32>
    %5 = vector.shape_cast %4 : vector<1x1x16x64xf32> to vector<16x64xf32>
    %6 = vector.broadcast %3 : f32 to vector<16x64xf32>
    %7 = arith.mulf %6, %5 : vector<16x64xf32>
    %8 = vector.broadcast %2 : f32 to vector<16x64xf32>
    %9 = arith.addf %8, %7 : vector<16x64xf32>
    %c1 = arith.constant 1 : index
    %10 = memref.load %arg1[%c1] : memref<8xf32, #tpu.memory_space<smem>>
    %c0_9 = arith.constant 0 : index
    %c1_10 = arith.constant 1 : index
    %c0_11 = arith.constant 0 : index
    %c0_12 = arith.constant 0 : index
    %11 = vector.load %arg3[%c0_9, %c1_10, %c0_11, %c0_12] : memref<1x4x16x64xf32, #tpu.memory_space<vmem>>, vector<1x1x16x64xf32>
    %12 = vector.shape_cast %11 : vector<1x1x16x64xf32> to vector<16x64xf32>
    %13 = vector.broadcast %10 : f32 to vector<16x64xf32>
    %14 = arith.mulf %13, %12 : vector<16x64xf32>
    %15 = arith.addf %9, %14 : vector<16x64xf32>
    %c2 = arith.constant 2 : index
    %16 = memref.load %arg1[%c2] : memref<8xf32, #tpu.memory_space<smem>>
    %c0_13 = arith.constant 0 : index
    %c2_14 = arith.constant 2 : index
    %c0_15 = arith.constant 0 : index
    %c0_16 = arith.constant 0 : index
    %17 = vector.load %arg3[%c0_13, %c2_14, %c0_15, %c0_16] : memref<1x4x16x64xf32, #tpu.memory_space<vmem>>, vector<1x1x16x64xf32>
    %18 = vector.shape_cast %17 : vector<1x1x16x64xf32> to vector<16x64xf32>
    %19 = vector.broadcast %16 : f32 to vector<16x64xf32>
    %20 = arith.mulf %19, %18 : vector<16x64xf32>
    %21 = arith.addf %15, %20 : vector<16x64xf32>
    %c3 = arith.constant 3 : index
    %22 = memref.load %arg1[%c3] : memref<8xf32, #tpu.memory_space<smem>>
    %c0_17 = arith.constant 0 : index
    %c3_18 = arith.constant 3 : index
    %c0_19 = arith.constant 0 : index
    %c0_20 = arith.constant 0 : index
    %23 = vector.load %arg3[%c0_17, %c3_18, %c0_19, %c0_20] : memref<1x4x16x64xf32, #tpu.memory_space<vmem>>, vector<1x1x16x64xf32>
    %24 = vector.shape_cast %23 : vector<1x1x16x64xf32> to vector<16x64xf32>
    %25 = vector.broadcast %22 : f32 to vector<16x64xf32>
    %26 = arith.mulf %25, %24 : vector<16x64xf32>
    %27 = arith.addf %21, %26 : vector<16x64xf32>
    %cst = arith.constant dense<0.000000e+00> : vector<32x64xf32>
    %28 = tpu.matmul %0, %27, %cst {dimension_numbers = #tpu.dot_dimension_numbers<[1], [0], [0], [1], [0, 0, 1, 1], [], []>} : vector<32x16xf32>, vector<16x64xf32>, vector<32x64xf32> -> vector<32x64xf32>
    %cst_21 = arith.constant dense<0.000000e+00> : vector<32x128xf32>
    %29 = tpu.matmul %28, %1, %cst_21 {dimension_numbers = #tpu.dot_dimension_numbers<[1], [0], [0], [1], [0, 0, 1, 1], [], []>} : vector<32x64xf32>, vector<64x128xf32>, vector<32x128xf32> -> vector<32x128xf32>
    %c0_22 = arith.constant 0 : index
    %c0_23 = arith.constant 0 : index
    %c0_24 = arith.constant 0 : index
    %c0_25 = arith.constant 0 : index
    %30 = vector.load %arg6[%c0_22, %c0_23, %c0_24, %c0_25] : memref<1x2x32x128xf32, #tpu.memory_space<vmem>>, vector<1x1x32x128xf32>
    %31 = vector.shape_cast %30 : vector<1x1x32x128xf32> to vector<32x128xf32>
    %32 = vector.shape_cast %29 : vector<32x128xf32> to vector<1x1x32x128xf32>
    tpu.vector_store %arg6[%c0_22, %c0_23, %c0_24, %c0_25], %32 {strides = array<i32>} : memref<1x2x32x128xf32, #tpu.memory_space<vmem>>, vector<1x1x32x128xf32>,
    %c1_26 = arith.constant 1 : index
    %33 = memref.load %arg2[%c1_26] : memref<2xf32, #tpu.memory_space<smem>>
    %c4 = arith.constant 4 : index
    %34 = memref.load %arg1[%c4] : memref<8xf32, #tpu.memory_space<smem>>
    %c0_27 = arith.constant 0 : index
    %c0_28 = arith.constant 0 : index
    %c0_29 = arith.constant 0 : index
    %c0_30 = arith.constant 0 : index
    %35 = vector.load %arg3[%c0_27, %c0_28, %c0_29, %c0_30] : memref<1x4x16x64xf32, #tpu.memory_space<vmem>>, vector<1x1x16x64xf32>
    %36 = vector.shape_cast %35 : vector<1x1x16x64xf32> to vector<16x64xf32>
    %37 = vector.broadcast %34 : f32 to vector<16x64xf32>
    %38 = arith.mulf %37, %36 : vector<16x64xf32>
    %39 = vector.broadcast %33 : f32 to vector<16x64xf32>
    %40 = arith.addf %39, %38 : vector<16x64xf32>
    %c5 = arith.constant 5 : index
    %41 = memref.load %arg1[%c5] : memref<8xf32, #tpu.memory_space<smem>>
    %c0_31 = arith.constant 0 : index
    %c1_32 = arith.constant 1 : index
    %c0_33 = arith.constant 0 : index
    %c0_34 = arith.constant 0 : index
    %42 = vector.load %arg3[%c0_31, %c1_32, %c0_33, %c0_34] : memref<1x4x16x64xf32, #tpu.memory_space<vmem>>, vector<1x1x16x64xf32>
    %43 = vector.shape_cast %42 : vector<1x1x16x64xf32> to vector<16x64xf32>
    %44 = vector.broadcast %41 : f32 to vector<16x64xf32>
    %45 = arith.mulf %44, %43 : vector<16x64xf32>
    %46 = arith.addf %40, %45 : vector<16x64xf32>
    %c6 = arith.constant 6 : index
    %47 = memref.load %arg1[%c6] : memref<8xf32, #tpu.memory_space<smem>>
    %c0_35 = arith.constant 0 : index
    %c2_36 = arith.constant 2 : index
    %c0_37 = arith.constant 0 : index
    %c0_38 = arith.constant 0 : index
    %48 = vector.load %arg3[%c0_35, %c2_36, %c0_37, %c0_38] : memref<1x4x16x64xf32, #tpu.memory_space<vmem>>, vector<1x1x16x64xf32>
    %49 = vector.shape_cast %48 : vector<1x1x16x64xf32> to vector<16x64xf32>
    %50 = vector.broadcast %47 : f32 to vector<16x64xf32>
    %51 = arith.mulf %50, %49 : vector<16x64xf32>
    %52 = arith.addf %46, %51 : vector<16x64xf32>
    %c7 = arith.constant 7 : index
    %53 = memref.load %arg1[%c7] : memref<8xf32, #tpu.memory_space<smem>>
    %c0_39 = arith.constant 0 : index
    %c3_40 = arith.constant 3 : index
    %c0_41 = arith.constant 0 : index
    %c0_42 = arith.constant 0 : index
    %54 = vector.load %arg3[%c0_39, %c3_40, %c0_41, %c0_42] : memref<1x4x16x64xf32, #tpu.memory_space<vmem>>, vector<1x1x16x64xf32>
    %55 = vector.shape_cast %54 : vector<1x1x16x64xf32> to vector<16x64xf32>
    %56 = vector.broadcast %53 : f32 to vector<16x64xf32>
    %57 = arith.mulf %56, %55 : vector<16x64xf32>
    %58 = arith.addf %52, %57 : vector<16x64xf32>
    %cst_43 = arith.constant dense<0.000000e+00> : vector<32x64xf32>
    %59 = tpu.matmul %0, %58, %cst_43 {dimension_numbers = #tpu.dot_dimension_numbers<[1], [0], [0], [1], [0, 0, 1, 1], [], []>} : vector<32x16xf32>, vector<16x64xf32>, vector<32x64xf32> -> vector<32x64xf32>
    %cst_44 = arith.constant dense<0.000000e+00> : vector<32x128xf32>
    %60 = tpu.matmul %59, %1, %cst_44 {dimension_numbers = #tpu.dot_dimension_numbers<[1], [0], [0], [1], [0, 0, 1, 1], [], []>} : vector<32x64xf32>, vector<64x128xf32>, vector<32x128xf32> -> vector<32x128xf32>
    %c0_45 = arith.constant 0 : index
    %c1_46 = arith.constant 1 : index
    %c0_47 = arith.constant 0 : index
    %c0_48 = arith.constant 0 : index
    %61 = vector.load %arg6[%c0_45, %c1_46, %c0_47, %c0_48] : memref<1x2x32x128xf32, #tpu.memory_space<vmem>>, vector<1x1x32x128xf32>
    %62 = vector.shape_cast %61 : vector<1x1x32x128xf32> to vector<32x128xf32>
    %63 = vector.shape_cast %60 : vector<32x128xf32> to vector<1x1x32x128xf32>
    tpu.vector_store %arg6[%c0_45, %c1_46, %c0_47, %c0_48], %63 {strides = array<i32>} : memref<1x2x32x128xf32, #tpu.memory_space<vmem>>, vector<1x1x32x128xf32>,
    return
  }
  func.func @transform_0(%arg0: i32) -> i32 {
    %c0_i32 = arith.constant 0 : i32
    %c0_i32_0 = arith.constant 0 : i32
    return %c0_i32 : i32
  }
  func.func @transform_1(%arg0: i32) -> i32 {
    %c0_i32 = arith.constant 0 : i32
    %c0_i32_0 = arith.constant 0 : i32
    return %c0_i32 : i32
  }
  func.func @transform_2(%arg0: i32) -> (i32, i32, i32, i32) {
    %c0_i32 = arith.constant 0 : i32
    %c0_i32_0 = arith.constant 0 : i32
    %c0_i32_1 = arith.constant 0 : i32
    %c0_i32_2 = arith.constant 0 : i32
    return %arg0, %c0_i32, %c0_i32_0, %c0_i32_1 : i32, i32, i32, i32
  }
  func.func @transform_3(%arg0: i32) -> (i32, i32) {
    %c0_i32 = arith.constant 0 : i32
    %c0_i32_0 = arith.constant 0 : i32
    %c0_i32_1 = arith.constant 0 : i32
    return %c0_i32, %c0_i32_0 : i32, i32
  }
  func.func @transform_4(%arg0: i32) -> (i32, i32) {
    %c0_i32 = arith.constant 0 : i32
    %c0_i32_0 = arith.constant 0 : i32
    %c0_i32_1 = arith.constant 0 : i32
    return %c0_i32, %c0_i32_0 : i32, i32
  }
  func.func @transform_5(%arg0: i32) -> (i32, i32, i32, i32) {
    %c0_i32 = arith.constant 0 : i32
    %c0_i32_0 = arith.constant 0 : i32
    %c0_i32_1 = arith.constant 0 : i32
    %c0_i32_2 = arith.constant 0 : i32
    return %arg0, %c0_i32, %c0_i32_0, %c0_i32_1 : i32, i32, i32, i32
  }
}

</mosaic_0001>

<bundles_post_ra>
// kernel: tpu_custom_call.1
= control target key start
LH: loop header
LB: loop body
LE: loop exit
PB: predicated region body
PF: predicated region fallthrough
CT: control target
= control target key end

     0   :  { %10 = vsyncpa [#allocation5], 0  ;;  %s972_s0 = inlined_call_operand.vmem [shape: f32[8], index: 0, kind: input, shape index: {}]   ;;  %s973_s1 = inlined_call_operand.vmem [shape: f32[2], index: 1, kind: input, shape index: {}]   ;;  %s974_s2 = inlined_call_operand.hbm [shape: f32[1,4,16,64], index: 2, kind: input, shape index: {}]   ;;  %s975_s3 = inlined_call_operand.vmem [shape: f32[32,16], index: 3, kind: input, shape index: {}]   ;;  %s976_s4 = inlined_call_operand.hbm [shape: f32[64,128], index: 4, kind: input, shape index: {}]   ;;  %s977_s5 = inlined_call_operand.hbm [shape: f32[1,2,32,128], index: 5, kind: output, shape index: {}]  }
   0x1   :  { %11 = vsyncpa [#allocation7], 0 }
   0x2   :  { %12 = vsyncpa [#allocation3], 0 }
   0x3   :  { %13 = vsyncpa [#allocation10], 0 }
   0x4   :  { %14 = vsyncpa [#allocation4], 0  ;;  %s21_s20 = sshll.u32 %s972_s0, 4  ;;  %s31_s23 = sshll.u32 %s973_s1, 4  ;;  %s22_s20 = int_to_ptr.vmem [resolvable:$true] %s21_s20  ;;  %s32_s23 = int_to_ptr.vmem [resolvable:$true] %s31_s23 }
   0x5   :  { %s735_s24 = scalar_lea.vmem %s22_s20, 16  ;;  %p740_p1 = scmp.lt.s32.totalorder %s22_s20, %s22_s20 }
   0x6   :  { %p736_p0 = scmp.ne.s32.totalorder %s22_s20, %s735_s24  ;;  %p741_p2 = scmp.lt.s32.totalorder %s735_s24, %s735_s24 }
   0x8   :  { %p742_p3 = por %p741_p2, %p740_p1 }
   0xa   :  { %p743_p4 = pnand %p742_p3, %p736_p0 }
   0xc   :  { %746 = shalt.err (!%p743_p4)
}
   0xd   :  { %s835_s25 = smov [#allocation2]   ;;  %s747_s26 = scalar_lea.vmem %s32_s23, 16 }
   0xe   :  { %24 = dma.vmem_to_smem %s22_s20, 16, %s835_s25, [#allocation5]  }
   0xf   :  { %p748_p5 = scmp.ne.s32.totalorder %s32_s23, %s747_s26  ;;  %p752_p6 = scmp.lt.s32.totalorder %s32_s23, %s32_s23 }
  0x10   :  { %p753_p7 = scmp.lt.s32.totalorder %s747_s26, %s747_s26 }
  0x12   :  { %p754_p8 = por %p753_p7, %p752_p6 }
  0x14   :  { %p755_p9 = pnand %p754_p8, %p748_p5 }
  0x16   :  { %758 = shalt.err (!%p755_p9)
}
  0x17   :  { %s836_s0 = smov [#allocation6]   ;;  %s837_s1 = smov [#allocation8]  }
  0x18   :  { %34 = dma.vmem_to_smem %s32_s23, 16, %s836_s0, [#allocation7]  }
  0x19   :  { %s40_s27 = sshll.u32 %s837_s1, 4  ;;  %s759_s30 = scalar_lea.hbm %s974_s2, 1024  ;;  %s41_s27 = int_to_ptr.vmem [resolvable:$true] %s40_s27 }
  0x1a   :  { %p760_p10 = scmp.ne.s32.totalorder %s974_s2, %s759_s30  ;;  %p763_p11 = scmp.lt.u32.totalorder %s759_s30, %s974_s2 }
  0x1c   :  { %p765_p12 = pnand %p763_p11, %p760_p10 }
  0x1e   :  { %768 = shalt.err (!%p765_p12)
}
  0x1f   :  { %s769_s10 = scalar_lea.vmem %s41_s27, 1024  ;;  %p774_p0 = scmp.lt.s32.totalorder %s41_s27, %s41_s27 }
  0x20   :  { %p770_p13 = scmp.ne.s32.totalorder %s41_s27, %s769_s10  ;;  %p775_p1 = scmp.lt.s32.totalorder %s769_s10, %s769_s10 }
  0x22   :  { %p776_p2 = por %p775_p1, %p774_p0 }
  0x24   :  { %p777_p3 = pnand %p776_p2, %p770_p13 }
  0x26   :  { %780 = shalt.err (!%p777_p3)
}
  0x27   :  { %s838_s11 = smov 128   ;;  %s839_s12 = smov 8  }
  0x28   :  { %46 = dma.hbm_to_vmem [thread:$0]  %s974_s2, 1024, %s41_s27, [#allocation3], %s838_s11, %s838_s11, %s839_s12  }
  0x29   :  { %s840_s15 = smov [#allocation9]   ;;  %s781_s19 = scalar_lea.hbm %s976_s4, 1024 }
  0x2a   :  { %s54_s16 = sshll.u32 %s840_s15, 4  ;;  %p782_p4 = scmp.ne.s32.totalorder %s976_s4, %s781_s19  ;;  %s55_s16 = int_to_ptr.vmem [resolvable:$true] %s54_s16 }
  0x2b   :  { %p785_p5 = scmp.lt.u32.totalorder %s781_s19, %s976_s4 }
  0x2d   :  { %p787_p6 = pnand %p785_p5, %p782_p4 }
  0x2f   :  { %790 = shalt.err (!%p787_p6)
}
  0x30   :  { %s791_s24 = scalar_lea.vmem %s55_s16, 1024  ;;  %p796_p8 = scmp.lt.s32.totalorder %s55_s16, %s55_s16 }
  0x31   :  { %p792_p7 = scmp.ne.s32.totalorder %s55_s16, %s791_s24  ;;  %p797_p9 = scmp.lt.s32.totalorder %s791_s24, %s791_s24 }
  0x33   :  { %p798_p10 = por %p797_p9, %p796_p8 }
  0x35   :  { %p799_p11 = pnand %p798_p10, %p792_p7 }
  0x37   :  { %802 = shalt.err (!%p799_p11)
}
  0x38   :  { %60 = dma.hbm_to_vmem [thread:$0]  %s976_s4, 1024, %s55_s16, [#allocation10], %s838_s11, %s838_s11, %s839_s12  }
  0x39   :  { %825 = dma.done.wait [#allocation5], 16  }
  0x3a   :  { %826 = vsyncadd [#allocation5], 4294967280 }
  0x3b   :  { %827 = dma.done.wait [#allocation7], 16  }
  0x3c   :  { %828 = vsyncadd [#allocation7], 4294967280 }
  0x3d   :  { %829 = dma.done.wait [#allocation3], 1024  }
  0x3e   :  { %830 = vsyncadd [#allocation3], 4294966272 }
  0x3f   :  { %831 = dma.done.wait [#allocation10], 1024  }
  0x40   :  { %832 = vsyncadd [#allocation10], 4294966272 }
  0x41   :  { %73 = sfence }
  0x42   :  { %s908_s26 = sld [smem:[#allocation6]]  ;;  %s564_s1 = sld [smem:[#allocation2 + $0x1]]  ;;  %vm123_vm0 = vcmask 130048   ;;  %v88_v0 = vld [vmem:[#allocation8] sm:$0xff]  ;;  %v89_v2 = vld [vmem:[#allocation8 + $0x8] sm:$0xff]  ;;  %v98_v3 = vld [vmem:[#allocation8 + $0x10] sm:$0xff] }
  0x43   :  { %s87_s0 = sld [smem:[#allocation2]]  ;;  %s565_s27 = sld [smem:[#allocation2 + $0x2]]  ;;  %v74_v1 = vld [vmem:[%s975_s3] sm:$0xff]  ;;  %v99_v4 = vld [vmem:[#allocation8 + $0x18] sm:$0xff]  ;;  %v108_v6 = vld [vmem:[#allocation8 + $0x28] sm:$0xff]  ;;  %vm221_vm1 = vcmask 523264  }
  0x44   :  { %s910_s28 = sld [smem:[#allocation2 + $0x3]]  ;;  %s912_s4 = sld [smem:[#allocation6 + $0x1]]  ;;  %628 = vmatprep.mubr.msk.f32.mxu1 %vm123_vm0, %v74_v1  ;;  %660 = vmatprep.mubr.msk.f32.mxu0 %vm123_vm0, %v74_v1  ;;  %v107_v5 = vld [vmem:[#allocation8 + $0x20] sm:$0xff]  ;;  %v116_v13 = vld [vmem:[#allocation8 + $0x30] sm:$0xff]  ;;  %v117_v14 = vld [vmem:[#allocation8 + $0x38] sm:$0xff] }
  0x45   :  { %s914_s29 = sld [smem:[#allocation2 + $0x4]]  ;;  %s919_s7 = sld [smem:[#allocation2 + $0x5]]  ;;  %v78_v43 = vld [vmem:[#allocation9] sm:$0xff]  ;;  %v79_v44 = vld [vmem:[#allocation9 + $0x8] sm:$0xff]  ;;  %v80_v55 = vld [vmem:[#allocation9 + $0x10] sm:$0xff] }
  0x46   :  { %s923_s8 = sld [smem:[#allocation2 + $0x6]]  ;;  %s925_s9 = sld [smem:[#allocation2 + $0x7]]  ;;  %v692_v52 = vpack.c.bf16 %v79_v44, %v78_v43  ;;  %v81_v56 = vld [vmem:[#allocation9 + $0x18] sm:$0xff]  ;;  %v75_v58 = vld [vmem:[%s975_s3 + $0x8] sm:$0xff]  ;;  %v76_v59 = vld [vmem:[%s975_s3 + $0x10] sm:$0xff] }
  0x47   :  { %v696_v60 = vpack.c.bf16 %v81_v56, %v80_v55  ;;  %v82_v61 = vld [vmem:[#allocation9 + $0x20] sm:$0xff]  ;;  %v83_v62 = vld [vmem:[#allocation9 + $0x28] sm:$0xff]  ;;  %v77_v63 = vld [vmem:[%s975_s3 + $0x18] sm:$0xff]  ;;  %s841_s3 = smov [#allocation11]  }
  0x48   :  { %v93_v8 = vstv %s908_s26  ;;  %v100_v11 = vstv %s564_s1  ;;  %v84_v1 = vld [vmem:[#allocation9 + $0x30] sm:$0xff]  ;;  %s549_s18 = sshll.u32 %s841_s3, 4  ;;  %s550_s18 = int_to_ptr.vmem [resolvable:$true] %s549_s18 }
  0x49   :  { %v90_v7 = vstv %s87_s0  ;;  %v109_v12 = vstv %s565_s27  ;;  %v101_v15 = vmul.f32 %v100_v11, %v98_v3  ;;  %v102_v16 = vmul.f32 %v100_v11, %v99_v4  ;;  %s803_s19 = scalar_lea.vmem %s550_s18, 1024  ;;  %p808_p13 = scmp.lt.s32.totalorder %s550_s18, %s550_s18 }
  0x4a   :  { %v91_v9 = vmul.f32 %v90_v7, %v88_v0  ;;  %v92_v10 = vmul.f32 %v90_v7, %v89_v2  ;;  %v110_v17 = vmul.f32 %v109_v12, %v107_v5  ;;  %v111_v18 = vmul.f32 %v109_v12, %v108_v6  ;;  %p804_p12 = scmp.ne.s32.totalorder %s550_s18, %s803_s19  ;;  %p809_p0 = scmp.lt.s32.totalorder %s803_s19, %s803_s19 }
  0x4b   :  { %v118_v21 = vstv %s910_s28  ;;  %v327_v22 = vstv %s914_s29  ;;  %v330_v29 = vstv %s912_s4  ;;  %v336_v30 = vstv %s919_s7 }
  0x4c   :  { %v94_v19 = vadd.f32 %v93_v8, %v91_v9  ;;  %v95_v20 = vadd.f32 %v93_v8, %v92_v10  ;;  %v119_v23 = vmul.f32 %v118_v21, %v116_v13  ;;  %v120_v24 = vmul.f32 %v118_v21, %v117_v14  ;;  %p810_p1 = por %p809_p0, %p808_p13 }
  0x4d   :  { %v328_v25 = vmul.f32 %v327_v22, %v88_v0  ;;  %v329_v26 = vmul.f32 %v327_v22, %v89_v2  ;;  %v337_v33 = vmul.f32 %v336_v30, %v98_v3  ;;  %v338_v34 = vmul.f32 %v336_v30, %v99_v4  ;;  %v85_v2 = vld [vmem:[#allocation9 + $0x38] sm:$0xff] }
  0x4e   :  { %v103_v27 = vadd.f32 %v101_v15, %v94_v19  ;;  %v104_v28 = vadd.f32 %v102_v16, %v95_v20  ;;  %v344_v37 = vstv %s923_s8  ;;  %v352_v38 = vstv %s925_s9  ;;  %p811_p2 = pnand %p810_p1, %p804_p12 }
  0x4f   :  { %v331_v31 = vadd.f32 %v330_v29, %v328_v25  ;;  %v332_v32 = vadd.f32 %v330_v29, %v329_v26  ;;  %v345_v41 = vmul.f32 %v344_v37, %v107_v5  ;;  %v346_v42 = vmul.f32 %v344_v37, %v108_v6 }
  0x50   :  { %v112_v35 = vadd.f32 %v110_v17, %v103_v27  ;;  %v113_v36 = vadd.f32 %v111_v18, %v104_v28  ;;  %v353_v47 = vmul.f32 %v352_v38, %v116_v13  ;;  %v354_v48 = vmul.f32 %v352_v38, %v117_v14 }
  0x51   :  { %v339_v39 = vadd.f32 %v337_v33, %v331_v31  ;;  %v340_v40 = vadd.f32 %v338_v34, %v332_v32  ;;  %v700_v0 = vpack.c.bf16 %v83_v62, %v82_v61  ;;  %v704_v3 = vpack.c.bf16 %v85_v2, %v84_v1 }
  0x52   :  { %v121_v45 = vadd.f32 %v119_v23, %v112_v35  ;;  %v122_v46 = vadd.f32 %v120_v24, %v113_v36 }
  0x53   :  { %v347_v49 = vadd.f32 %v345_v41, %v339_v39  ;;  %v348_v50 = vadd.f32 %v346_v42, %v340_v40 }
  0x54   :  { %v688_v51 = vpack.c.bf16 %v122_v46, %v121_v45 }
  0x55   :  { %v355_v53 = vadd.f32 %v353_v47, %v347_v49  ;;  %v356_v54 = vadd.f32 %v354_v48, %v348_v50 }
  0x56   :  { %689 = vmatprep.subr.bf16.mxu1 %v688_v51 }
  0x57   :  { %v708_v57 = vpack.c.bf16 %v356_v54, %v355_v53  ;;  %691 = vmatpush3.bf16.msra.mxu1 %v688_v51 }
  0x58   :  { %693 = vmatprep.subr.bf16.mxu1 %v692_v52 }
  0x59   :  { %709 = vmatprep.subr.bf16.mxu0 %v708_v57 }
  0x5a   :  { %711 = vmatpush3.bf16.msra.mxu0 %v708_v57  ;;  %629 = vmatmul.mubr.msk.f32.vlgmr.msra.gmra.mrb[0].mxu1 %vm123_vm0, %v75_v58 }
  0x5b   :  { %631 = vmatprep.mubr.msk.f32.mxu1 %vm123_vm0, %v76_v59  ;;  %713 = vmatprep.subr.bf16.mxu0 %v692_v52 }
  0x5c   :  { %695 = vmatpush3.bf16.msra.mxu1 %v692_v52 }
  0x5d   :  { %661 = vmatmul.mubr.msk.f32.vlgmr.msra.gmra.mrb[0].mxu0 %vm123_vm0, %v75_v58  ;;  %697 = vmatprep.subr.bf16.mxu1 %v696_v60 }
  0x5e   :  { %663 = vmatprep.mubr.msk.f32.mxu0 %vm123_vm0, %v76_v59  ;;  %632 = vmatmul.mubr.msk.f32.gmra.mrb[2].mxu1 %vm123_vm0, %v77_v63 }
  0x5f   :  { %715 = vmatpush3.bf16.msra.mxu0 %v692_v52 }
  0x60   :  { %717 = vmatprep.subr.bf16.mxu0 %v696_v60  ;;  %699 = vmatpush3.bf16.msra.mxu1 %v696_v60 }
  0x61   :  { %664 = vmatmul.mubr.msk.f32.gmra.mrb[2].mxu0 %vm123_vm0, %v77_v63  ;;  %701 = vmatprep.subr.bf16.mxu1 %v700_v0 }
  0x63   :  { %719 = vmatpush3.bf16.msra.mxu0 %v696_v60 }
  0x64   :  { %721 = vmatprep.subr.bf16.mxu0 %v700_v0  ;;  %703 = vmatpush3.bf16.msra.mxu1 %v700_v0 }
  0x65   :  { %705 = vmatprep.subr.bf16.mxu1 %v704_v3 }
  0x67   :  { %723 = vmatpush3.bf16.msra.mxu0 %v700_v0 }
  0x68   :  { %725 = vmatprep.subr.bf16.mxu0 %v704_v3  ;;  %707 = vmatpush3.bf16.msra.mxu1 %v704_v3 }
  0x6b   :  { %727 = vmatpush3.bf16.msra.mxu0 %v704_v3 }
 0x12d   :  { %v630_v4 = vpop.f32.mrb[0].mxu1 }
 0x12e   :  { %v202_v5 = vpop.f32.mrb[1].mxu1 }
 0x12f   :  { %650 = vmatprep.mubr.msk.f32.mxu1 %vm221_vm1, %v202_v5 }
 0x130   :  { %v662_v6 = vpop.f32.mrb[0].mxu0  ;;  %651 = vmatmul.mubr.msk.f32.vlgmr.msra.gmra.mrb[4].mxu1 %vm221_vm1, %v630_v4 }
 0x131   :  { %v423_v7 = vpop.f32.mrb[1].mxu0  ;;  %v633_v8 = vpop.f32.mrb[2].mxu1 }
 0x132   :  { %682 = vmatprep.mubr.msk.f32.mxu0 %vm221_vm1, %v423_v7  ;;  %v212_v9 = vpop.f32.mrb[3].mxu1 }
 0x133   :  { %683 = vmatmul.mubr.msk.f32.vlgmr.msra.gmra.mrb[4].mxu0 %vm221_vm1, %v662_v6  ;;  %653 = vmatprep.mubr.msk.f32.mxu1 %vm221_vm1, %v212_v9 }
 0x134   :  { %v665_v10 = vpop.f32.mrb[2].mxu0  ;;  %654 = vmatmul.mubr.msk.f32.gmra.mrb[6].mxu1 %vm221_vm1, %v633_v8 }
 0x135   :  { %v433_v11 = vpop.f32.mrb[3].mxu0 }
 0x136   :  { %685 = vmatprep.mubr.msk.f32.mxu0 %vm221_vm1, %v433_v11 }
 0x137   :  { %686 = vmatmul.mubr.msk.f32.gmra.mrb[6].mxu0 %vm221_vm1, %v665_v10 }
 0x203   :  { %v652_v12 = vpop.f32.mrb[4].mxu1 }
 0x204   :  { %320 = vst [vmem:[#allocation11 + $0x8] sm:$0xff] %v652_v12  ;;  %v300_v13 = vpop.f32.mrb[5].mxu1 }
 0x205   :  { %319 = vst [vmem:[#allocation11] sm:$0xff] %v300_v13 }
 0x206   :  { %v684_v14 = vpop.f32.mrb[4].mxu0 }
 0x207   :  { %541 = vst [vmem:[#allocation11 + $0x28] sm:$0xff] %v684_v14  ;;  %v520_v15 = vpop.f32.mrb[5].mxu0  ;;  %v655_v16 = vpop.f32.mrb[6].mxu1 }
 0x208   :  { %540 = vst [vmem:[#allocation11 + $0x20] sm:$0xff] %v520_v15  ;;  %322 = vst [vmem:[#allocation11 + $0x18] sm:$0xff] %v655_v16  ;;  %v310_v17 = vpop.f32.mrb[7].mxu1 }
 0x209   :  { %321 = vst [vmem:[#allocation11 + $0x10] sm:$0xff] %v310_v17 }
 0x20a   :  { %v687_v18 = vpop.f32.mrb[6].mxu0 }
 0x20b   :  { %543 = vst [vmem:[#allocation11 + $0x38] sm:$0xff] %v687_v18  ;;  %v530_v19 = vpop.f32.mrb[7].mxu0 }
 0x20c   :  { %542 = vst [vmem:[#allocation11 + $0x30] sm:$0xff] %v530_v19 }
 0x20d   :  { %814 = shalt.err (!%p811_p2)
}
 0x20e   :  { %s815_s22 = scalar_lea.hbm %s977_s5, 1024 }
 0x20f   :  { %p816_p3 = scmp.ne.s32.totalorder %s977_s5, %s815_s22  ;;  %p819_p4 = scmp.lt.u32.totalorder %s815_s22, %s977_s5 }
 0x211   :  { %p821_p5 = pnand %p819_p4, %p816_p3 }
 0x213   :  { %824 = shalt.err (!%p821_p5)
}
 0x214   :  { %555 = dma.vmem_to_hbm [thread:$0]  %s550_s18, 1024, %s977_s5, [#allocation4], %s838_s11, %s838_s11, %s839_s12  }
 0x215   :  { %833 = dma.done.wait [#allocation4], 1024  }
 0x216   :  { %834 = vsyncadd [#allocation4], 4294966272 }
 0x217   :  { %559 = vsyncpa [#allocation3], 1 }
 0x218   :  { %560 = vsyncpa [#allocation10], 1 }
 0x219   :  { %561 = vsyncpa [#allocation4], 1 }
 0x21a   :  { %562 = vsyncpa [#allocation5], 1 }
 0x21b   :  { %563 = vsyncpa [#allocation7], 1 }

</bundles_post_ra>
